<compile_context>
chip_gen: v5e
topology: v5e:2x2
jax: 0.10.0
libtpu: 0.0.40
codegen_flags: <defaults>
</compile_context>

<pallas_src>
import jax
import jax.numpy as jnp
from jax.experimental import pallas as pl
from jax.experimental.pallas import tpu as pltpu


def _cdiv(a, b):
    return -(-a // b)


def mlp_kernel(x_ref,
               w1_ref, b1_ref,
               w2_ref, b2_ref,
               w3_ref, b3_ref,
               w4_ref, b4_ref,
               o_ref):
    bf16 = jnp.bfloat16

    x = x_ref[...]
    if x.dtype != bf16:          # trace-time branch: skip the cast if caller fed bf16
        x = x.astype(bf16)

    # fc1 -> relu            (bn1 affine folded into fc2; dropout = identity in eval)
    h = jnp.dot(x, w1_ref[...], preferred_element_type=jnp.float32) + b1_ref[...]
    h = jnp.maximum(h, 0.0)

    # fc2 (bn1 folded in) -> relu
    h = jnp.dot(h.astype(bf16), w2_ref[...],
                preferred_element_type=jnp.float32) + b2_ref[...]
    h = jnp.maximum(h, 0.0)

    # fc3 (bn2 folded in) -> relu
    h = jnp.dot(h.astype(bf16), w3_ref[...],
                preferred_element_type=jnp.float32) + b3_ref[...]
    h = jnp.maximum(h, 0.0)

    # fc4 (bn3 folded in), out_features=1.
    # VPU broadcast-mul then reduce over the 64 features, computed on a
    # (tm//128, 128, 64) view so the result lands as a fully lane-dense
    # (tm//128, 128) tile: dense EUP exp/reciprocal and unmasked lane stores.
    _, sub, lanes = o_ref.shape                     # block = (1, tm//128, 128)
    hw = h * w4_ref[...]                            # (tm, 64) f32
    z = jnp.sum(hw.reshape(sub, lanes, hw.shape[-1]), axis=-1) + b4_ref[0, 0]

    # sigmoid: exp on EUP, approx reciprocal on EUP (no VPU divide sequence).
    o_ref[0] = pl.reciprocal(1.0 + jnp.exp(-z), approx=True)


def _plan_batch_tiling(batch, tm_max=2048):
    """Pick (tm, num_steps, padded_batch).

    tm is a multiple of 128 (dense output tiles) and <= tm_max; the step count is
    kept even and >= 2 when the batch spans more than one 128-row chunk so v7x's
    two TensorCores both get work (no effect on single-TC v5e/v6e).
    """
    tm_max = max(128, (min(tm_max, 8192) // 128) * 128)
    blocks = _cdiv(batch, 128)                 # 128-row chunks of the padded batch
    steps = _cdiv(blocks * 128, tm_max)        # steps needed at tm_max
    if blocks >= 2:
        steps = max(steps, 2)                  # keep both v7x TensorCores busy
        if steps % 2:
            steps += 1                         # even split across the 2 TCs
        steps = min(steps, blocks)             # at least one 128-chunk per step
    tm = _cdiv(blocks, steps) * 128
    steps = _cdiv(blocks, tm // 128)           # actual step count after rounding
    return tm, steps, steps * tm


def experimental_net_forward(x, folded_params, *, tm_max=2048):
    """x: (B, input_dim) f32 or bf16.  folded_params: (w1,b1,w2,b2,w3,b3,w4_row,b4)."""
    B, d_in = x.shape
    tm, num_steps, b_pad = _plan_batch_tiling(B, tm_max)
    sub = tm // 128

    xp = x if b_pad == B else jnp.pad(x, ((0, b_pad - B), (0, 0)))

    w1, b1, w2, b2, w3, b3, w4_row, b4 = folded_params
    vmem_params = (w1, b1, w2, b2, w3, b3, w4_row)

    in_specs = [pl.BlockSpec((tm, d_in), lambda i: (i, 0))]            # streamed activations
    in_specs += [pl.BlockSpec(p.shape, lambda i: (0, 0))               # VMEM-resident params
                 for p in vmem_params]
    in_specs += [pl.BlockSpec(memory_space=pltpu.MemorySpace.SMEM)]    # b4 scalar in SMEM

    # Lane-dense output: (num_steps, tm//128, 128), one dense block per grid step.
    out_specs = pl.BlockSpec((1, sub, 128), lambda i: (i, 0, 0))

    out = pl.pallas_call(
        mlp_kernel,
        out_shape=jax.ShapeDtypeStruct((num_steps, sub, 128), jnp.float32),
        grid=(num_steps,),
        in_specs=in_specs,
        out_specs=out_specs,
        compiler_params=pltpu.CompilerParams(
            dimension_semantics=("parallel",),
            # tm=2048 worst case: x double-buffer ~2 MiB (lane-padded f32) + ~3 MiB of
            # f32 intermediates + <0.1 MiB weights -- comfortably inside 32 MiB even on v7x.
            vmem_limit_bytes=32 * 1024 * 1024),
    )(xp, *vmem_params, b4)

    return out.reshape(b_pad, 1)[:B]


def init_raw_params(key, input_dim):
    """Deterministic eval-mode params matching ExperimentalNet's shapes."""
    eps = 1e-5
    dims = [(input_dim, 64), (64, 128), (128, 64), (64, 1)]
    keys = jax.random.split(key, 4 * len(dims))
    layers = []
    for li, (din, dout) in enumerate(dims):
        kw, kb, km, kv = keys[4 * li: 4 * li + 4]
        layer = {
            "w": jax.random.normal(kw, (din, dout), jnp.float32) * 0.08,
            "b": jax.random.normal(kb, (1, dout), jnp.float32) * 0.05,
        }
        if li < 3:  # BatchNorm1d after fc1/fc2/fc3 (eval mode, folded to scale/shift)
            gamma = 1.0 + 0.1 * jax.random.normal(km, (1, dout), jnp.float32)
            beta = 0.05 * jax.random.normal(kv, (1, dout), jnp.float32)
            run_mean = 0.1 * jax.random.normal(jax.random.fold_in(km, 1),
                                               (1, dout), jnp.float32)
            run_var = 1.0 + 0.1 * jnp.abs(
                jax.random.normal(jax.random.fold_in(kv, 1), (1, dout), jnp.float32))
            layer["s"] = gamma / jnp.sqrt(run_var + eps)        # (1, dout)
            layer["t"] = beta - run_mean * layer["s"]           # (1, dout)
        layers.append(layer)
    return layers


def fold_params(raw):
    """Fold BN_n (eval affine) into layer n+1; bf16 weights for the MXU layers.

    Returns (w1,b1, w2,b2, w3,b3, w4_row,b4):
      wN: (in, out) bf16 for N=1..3; w4_row: (1, 64) f32; bN: (1, out) f32; b4: (1, 1) f32.
    """
    folded = [raw[0]["w"].astype(jnp.bfloat16), raw[0]["b"]]
    for n in range(1, 4):
        s_prev = raw[n - 1]["s"]                       # (1, d_prev)
        t_prev = raw[n - 1]["t"]                       # (1, d_prev)
        w = raw[n]["w"] * s_prev.T                     # diag(s_prev) @ w   (f32)
        b = raw[n]["b"] + t_prev @ raw[n]["w"]         # b + t_prev @ w     (f32)
        if n < 3:
            folded += [w.astype(jnp.bfloat16), b]
        else:
            folded += [w.T.astype(jnp.float32), b]     # fc4 kept f32 row for VPU path
    return tuple(folded)


def reference_forward_matched(x, folded):
    """JAX reference with the same bf16-matmul / folded-BN semantics as the kernel."""
    w1, b1, w2, b2, w3, b3, w4_row, b4 = folded
    bf16 = jnp.bfloat16
    h = jnp.maximum(jnp.dot(x.astype(bf16), w1, preferred_element_type=jnp.float32) + b1, 0.0)
    h = jnp.maximum(jnp.dot(h.astype(bf16), w2, preferred_element_type=jnp.float32) + b2, 0.0)
    h = jnp.maximum(jnp.dot(h.astype(bf16), w3, preferred_element_type=jnp.float32) + b3, 0.0)
    z = jnp.sum(h * w4_row, axis=-1, keepdims=True) + b4
    return jax.nn.sigmoid(z)


def reference_forward_f32(x, raw):
    """Pure f32 eval-mode forward of the original module (unfolded BN)."""
    h = x
    for n in range(3):
        h = jnp.maximum(h @ raw[n]["w"] + raw[n]["b"], 0.0)
        h = h * raw[n]["s"] + raw[n]["t"]
    return jax.nn.sigmoid(h @ raw[3]["w"] + raw[3]["b"])


if __name__ == "__main__":
    INPUT_DIM = 32
    key = jax.random.PRNGKey(0)
    kx, kp = jax.random.split(key)

    raw = init_raw_params(kp, INPUT_DIM)
    params = fold_params(raw)

    # B=200 exercises batch padding + a 2-step grid at tm=128;
    # B=1000 exercises the larger-tile path (tm=512, 2 even steps for v7x).
    for B in (200, 1000):
        x = jax.random.normal(jax.random.fold_in(kx, B), (B, INPUT_DIM), jnp.float32)
        out = jax.block_until_ready(experimental_net_forward(x, params))
        assert out.shape == (B, 1)

        ref_matched = reference_forward_matched(x, params)
        ref_f32 = reference_forward_f32(x, raw)
        assert jnp.allclose(out, ref_matched, atol=5e-3, rtol=5e-3), \
            f"B={B}: mismatch vs bf16-matched JAX reference"
        assert jnp.allclose(out, ref_f32, atol=2e-2, rtol=2e-2), \
            f"B={B}: mismatch vs f32 eval-mode reference"

    print("KERNEL_OK")
</pallas_src>

<mosaic_0001>
module attributes {stable_mosaic.version = 11 : i64} {
  func.func @mlp_kernel(%arg0: i32, %arg1: memref<128x32xf32, #tpu.memory_space<vmem>>, %arg2: memref<32x64xbf16, #tpu.memory_space<vmem>>, %arg3: memref<1x64xf32, #tpu.memory_space<vmem>>, %arg4: memref<64x128xbf16, #tpu.memory_space<vmem>>, %arg5: memref<1x128xf32, #tpu.memory_space<vmem>>, %arg6: memref<128x64xbf16, #tpu.memory_space<vmem>>, %arg7: memref<1x64xf32, #tpu.memory_space<vmem>>, %arg8: memref<1x64xf32, #tpu.memory_space<vmem>>, %arg9: memref<1x1xf32, #tpu.memory_space<smem>>, %arg10: memref<1x1x128xf32, #tpu.memory_space<vmem>>) attributes {dimension_semantics = [#tpu.dimension_semantics<parallel>], iteration_bounds = array<i64: 2>, scalar_prefetch = 0 : i64, scratch_operands = 0 : i64, tpu.core_type = #tpu.core_type<tc>, window_params = [{transform_indices = @transform_0, window_bounds = array<i64: 128, 32>}, {pipeline_mode = #tpu.pipeline_mode<synchronous>, transform_indices = @transform_1, window_bounds = array<i64: 32, 64>}, {pipeline_mode = #tpu.pipeline_mode<synchronous>, transform_indices = @transform_2, window_bounds = array<i64: 1, 64>}, {pipeline_mode = #tpu.pipeline_mode<synchronous>, transform_indices = @transform_3, window_bounds = array<i64: 64, 128>}, {pipeline_mode = #tpu.pipeline_mode<synchronous>, transform_indices = @transform_4, window_bounds = array<i64: 1, 128>}, {pipeline_mode = #tpu.pipeline_mode<synchronous>, transform_indices = @transform_5, window_bounds = array<i64: 128, 64>}, {pipeline_mode = #tpu.pipeline_mode<synchronous>, transform_indices = @transform_6, window_bounds = array<i64: 1, 64>}, {pipeline_mode = #tpu.pipeline_mode<synchronous>, transform_indices = @transform_7, window_bounds = array<i64: 1, 64>}, {transform_indices = @transform_8, window_bounds = array<i64: 1, 1>}, {transform_indices = @transform_9, window_bounds = array<i64: 1, 1, 128>}]} {
    %c0 = arith.constant 0 : index
    %c0_0 = arith.constant 0 : index
    %0 = vector.load %arg1[%c0, %c0_0] : memref<128x32xf32, #tpu.memory_space<vmem>>, vector<128x32xf32>
    %1 = arith.truncf %0 : vector<128x32xf32> to vector<128x32xbf16>
    %c0_1 = arith.constant 0 : index
    %c0_2 = arith.constant 0 : index
    %2 = vector.load %arg2[%c0_1, %c0_2] : memref<32x64xbf16, #tpu.memory_space<vmem>>, vector<32x64xbf16>
    %cst = arith.constant dense<0.000000e+00> : vector<128x64xf32>
    %3 = tpu.matmul %1, %2, %cst {dimension_numbers = #tpu.dot_dimension_numbers<[1], [0], [0], [1], [0, 0, 1, 1], [], []>} : vector<128x32xbf16>, vector<32x64xbf16>, vector<128x64xf32> -> vector<128x64xf32>
    %c0_3 = arith.constant 0 : index
    %c0_4 = arith.constant 0 : index
    %4 = vector.load %arg3[%c0_3, %c0_4] : memref<1x64xf32, #tpu.memory_space<vmem>>, vector<1x64xf32>
    %5 = vector.broadcast %4 : vector<1x64xf32> to vector<128x64xf32>
    %6 = arith.addf %3, %5 : vector<128x64xf32>
    %cst_5 = arith.constant 0.000000e+00 : f32
    %7 = vector.broadcast %cst_5 : f32 to vector<128x64xf32>
    %8 = arith.maximumf %6, %7 : vector<128x64xf32>
    %9 = arith.truncf %8 : vector<128x64xf32> to vector<128x64xbf16>
    %c0_6 = arith.constant 0 : index
    %c0_7 = arith.constant 0 : index
    %10 = vector.load %arg4[%c0_6, %c0_7] : memref<64x128xbf16, #tpu.memory_space<vmem>>, vector<64x128xbf16>
    %cst_8 = arith.constant dense<0.000000e+00> : vector<128x128xf32>
    %11 = tpu.matmul %9, %10, %cst_8 {dimension_numbers = #tpu.dot_dimension_numbers<[1], [0], [0], [1], [0, 0, 1, 1], [], []>} : vector<128x64xbf16>, vector<64x128xbf16>, vector<128x128xf32> -> vector<128x128xf32>
    %c0_9 = arith.constant 0 : index
    %c0_10 = arith.constant 0 : index
    %12 = vector.load %arg5[%c0_9, %c0_10] : memref<1x128xf32, #tpu.memory_space<vmem>>, vector<1x128xf32>
    %13 = vector.broadcast %12 : vector<1x128xf32> to vector<128x128xf32>
    %14 = arith.addf %11, %13 : vector<128x128xf32>
    %cst_11 = arith.constant 0.000000e+00 : f32
    %15 = vector.broadcast %cst_11 : f32 to vector<128x128xf32>
    %16 = arith.maximumf %14, %15 : vector<128x128xf32>
    %17 = arith.truncf %16 : vector<128x128xf32> to vector<128x128xbf16>
    %c0_12 = arith.constant 0 : index
    %c0_13 = arith.constant 0 : index
    %18 = vector.load %arg6[%c0_12, %c0_13] : memref<128x64xbf16, #tpu.memory_space<vmem>>, vector<128x64xbf16>
    %cst_14 = arith.constant dense<0.000000e+00> : vector<128x64xf32>
    %19 = tpu.matmul %17, %18, %cst_14 {dimension_numbers = #tpu.dot_dimension_numbers<[1], [0], [0], [1], [0, 0, 1, 1], [], []>} : vector<128x128xbf16>, vector<128x64xbf16>, vector<128x64xf32> -> vector<128x64xf32>
    %c0_15 = arith.constant 0 : index
    %c0_16 = arith.constant 0 : index
    %20 = vector.load %arg7[%c0_15, %c0_16] : memref<1x64xf32, #tpu.memory_space<vmem>>, vector<1x64xf32>
    %21 = vector.broadcast %20 : vector<1x64xf32> to vector<128x64xf32>
    %22 = arith.addf %19, %21 : vector<128x64xf32>
    %cst_17 = arith.constant 0.000000e+00 : f32
    %23 = vector.broadcast %cst_17 : f32 to vector<128x64xf32>
    %24 = arith.maximumf %22, %23 : vector<128x64xf32>
    %c0_18 = arith.constant 0 : index
    %c0_19 = arith.constant 0 : index
    %25 = vector.load %arg8[%c0_18, %c0_19] : memref<1x64xf32, #tpu.memory_space<vmem>>, vector<1x64xf32>
    %26 = vector.broadcast %25 : vector<1x64xf32> to vector<128x64xf32>
    %27 = arith.mulf %24, %26 : vector<128x64xf32>
    %28 = vector.shape_cast %27 : vector<128x64xf32> to vector<1x128x64xf32>
    %cst_20 = arith.constant dense<0.000000e+00> : vector<1x128xf32>
    %29 = vector.multi_reduction <add>, %28, %cst_20 [2] : vector<1x128x64xf32> to vector<1x128xf32>
    %c0_21 = arith.constant 0 : index
    %c0_22 = arith.constant 0 : index
    %30 = memref.load %arg9[%c0_21, %c0_22] : memref<1x1xf32, #tpu.memory_space<smem>>
    %31 = vector.broadcast %30 : f32 to vector<1x128xf32>
    %32 = arith.addf %29, %31 : vector<1x128xf32>
    %cst_23 = arith.constant 0.000000e+00 : f32
    %33 = vector.broadcast %cst_23 : f32 to vector<1x128xf32>
    %34 = arith.subf %33, %32 : vector<1x128xf32>
    %35 = math.exp %34 : vector<1x128xf32>
    %cst_24 = arith.constant 1.000000e+00 : f32
    %36 = vector.broadcast %cst_24 : f32 to vector<1x128xf32>
    %37 = arith.addf %36, %35 : vector<1x128xf32>
    %38 = tpu.reciprocal %37 {approx = true} : vector<1x128xf32> -> vector<1x128xf32>
    %c0_25 = arith.constant 0 : index
    %c0_26 = arith.constant 0 : index
    %c0_27 = arith.constant 0 : index
    %39 = vector.load %arg10[%c0_25, %c0_26, %c0_27] : memref<1x1x128xf32, #tpu.memory_space<vmem>>, vector<1x1x128xf32>
    %40 = vector.shape_cast %39 : vector<1x1x128xf32> to vector<1x128xf32>
    %41 = vector.shape_cast %38 : vector<1x128xf32> to vector<1x1x128xf32>
    tpu.vector_store %arg10[%c0_25, %c0_26, %c0_27], %41 {strides = array<i32>} : memref<1x1x128xf32, #tpu.memory_space<vmem>>, vector<1x1x128xf32>,
    return
  }
  func.func @transform_0(%arg0: i32) -> (i32, i32) {
    %c0_i32 = arith.constant 0 : i32
    %c0_i32_0 = arith.constant 0 : i32
    return %arg0, %c0_i32 : i32, i32
  }
  func.func @transform_1(%arg0: i32) -> (i32, i32) {
    %c0_i32 = arith.constant 0 : i32
    %c0_i32_0 = arith.constant 0 : i32
    %c0_i32_1 = arith.constant 0 : i32
    return %c0_i32, %c0_i32_0 : i32, i32
  }
  func.func @transform_2(%arg0: i32) -> (i32, i32) {
    %c0_i32 = arith.constant 0 : i32
    %c0_i32_0 = arith.constant 0 : i32
    %c0_i32_1 = arith.constant 0 : i32
    return %c0_i32, %c0_i32_0 : i32, i32
  }
  func.func @transform_3(%arg0: i32) -> (i32, i32) {
    %c0_i32 = arith.constant 0 : i32
    %c0_i32_0 = arith.constant 0 : i32
    %c0_i32_1 = arith.constant 0 : i32
    return %c0_i32, %c0_i32_0 : i32, i32
  }
  func.func @transform_4(%arg0: i32) -> (i32, i32) {
    %c0_i32 = arith.constant 0 : i32
    %c0_i32_0 = arith.constant 0 : i32
    %c0_i32_1 = arith.constant 0 : i32
    return %c0_i32, %c0_i32_0 : i32, i32
  }
  func.func @transform_5(%arg0: i32) -> (i32, i32) {
    %c0_i32 = arith.constant 0 : i32
    %c0_i32_0 = arith.constant 0 : i32
    %c0_i32_1 = arith.constant 0 : i32
    return %c0_i32, %c0_i32_0 : i32, i32
  }
  func.func @transform_6(%arg0: i32) -> (i32, i32) {
    %c0_i32 = arith.constant 0 : i32
    %c0_i32_0 = arith.constant 0 : i32
    %c0_i32_1 = arith.constant 0 : i32
    return %c0_i32, %c0_i32_0 : i32, i32
  }
  func.func @transform_7(%arg0: i32) -> (i32, i32) {
    %c0_i32 = arith.constant 0 : i32
    %c0_i32_0 = arith.constant 0 : i32
    %c0_i32_1 = arith.constant 0 : i32
    return %c0_i32, %c0_i32_0 : i32, i32
  }
  func.func @transform_8(%arg0: i32) -> (i32, i32) {
    %c0_i32 = arith.constant 0 : i32
    %c0_i32_0 = arith.constant 0 : i32
    %c0_i32_1 = arith.constant 0 : i32
    return %c0_i32, %c0_i32_0 : i32, i32
  }
  func.func @transform_9(%arg0: i32) -> (i32, i32, i32) {
    %c0_i32 = arith.constant 0 : i32
    %c0_i32_0 = arith.constant 0 : i32
    %c0_i32_1 = arith.constant 0 : i32
    return %arg0, %c0_i32, %c0_i32_0 : i32, i32, i32
  }
}

</mosaic_0001>

<bundles_post_ra>
// kernel: tpu_custom_call.1
= control target key start
LH: loop header
LB: loop body
LE: loop exit
PB: predicated region body
PF: predicated region fallthrough
CT: control target
= control target key end

     0   :  { %s1681_s0 = inlined_call_operand.vmem [shape: f32[256,32], index: 0, kind: input, shape index: {}]   ;;  %s1682_s1 = inlined_call_operand.vmem [shape: bf16[32,64], index: 1, kind: input, shape index: {}]   ;;  %s1683_s2 = inlined_call_operand.vmem [shape: f32[1,64], index: 2, kind: input, shape index: {}]   ;;  %s1684_s3 = inlined_call_operand.vmem [shape: bf16[64,128], index: 3, kind: input, shape index: {}]   ;;  %s1685_s4 = inlined_call_operand.vmem [shape: f32[1,128], index: 4, kind: input, shape index: {}]   ;;  %s1686_s5 = inlined_call_operand.vmem [shape: bf16[128,64], index: 5, kind: input, shape index: {}]   ;;  %s1687_s6 = inlined_call_operand.vmem [shape: f32[1,64], index: 6, kind: input, shape index: {}]   ;;  %s1688_s7 = inlined_call_operand.vmem [shape: f32[1,64], index: 7, kind: input, shape index: {}]   ;;  %s1689_s8 = inlined_call_operand.<no memory space> [shape: f32[1,1], index: 8, kind: input, shape index: {}]   ;;  %s1690_s9 = inlined_call_operand.hbm [shape: f32[2,1,128], index: 9, kind: output, shape index: {}]  }
   0x1   :  { %14 = sst [smem:[#allocation2]] %s1689_s8 }
   0x2   :  { %15 = vsyncpa [#allocation4], 0 }
   0x3   :  { %17 = vsyncpa [#allocation4 + $0x1], 0  ;;  %s1384_s11 = smov 0   ;;  %s1386_s12 = smov 0  }
   0x4   :  { %s1388_s13 = smov 0   ;;  %s1390_s14 = smov 0  }
   0x5 LB: > { %s1405_s8 = sadd.s32 4294967295, %s1329_s14   ;;  %s1058_s15 = sadd.s32 4294967294, %s1329_s14   ;;  %s1329_s14 = sphi %s1390_s14, %s1696_s14   ;;  %s1325_s13 = sphi %s1388_s13, %s1695_s13   ;;  %s1321_s12 = sphi %s1386_s12, %s1694_s12   ;;  %s1317_s11 = sphi %s1384_s11, %s1693_s11  }
   0x6   : > { %s1409_s16 = sadd.s32 1, %s1329_s14   ;;  %s224_s17 = sadd.s32 1, %s1325_s13 }
   0x7   : > { %s221_s18 = ssub.s32 %s1329_s14, %s1409_s16  ;;  %p234_p0 = scmp.ne.s32.totalorder %s1325_s13, %s1321_s12 }
   0x8   : > { %p222_p1 = scmp.eq.s32.totalorder %s221_s18, 0  ;;  %p235_p2 = scmp.eq.s32.totalorder %s1405_s8, 1 }
   0x9   : > { %p240_p3 = scmp.ne.s32.totalorder %s1321_s12, %s1317_s11  ;;  %p241_p4 = scmp.eq.s32.totalorder %s1058_s15, 1 }
   0xa   : > { %s1420_s19 = scalar_select %p222_p1, %s1325_s13, %s224_s17  }
   0xb   : > { %p1422_p5 = por %p235_p2, %p234_p0  ;;  %p1426_p6 = por %p241_p4, %p240_p3 }
   0xc   : > { %p1061_p7 = scmp.ge.s32.totalorder %s1329_s14, 1  ;;  %p292_p8 = scmp.lt.s32.totalorder %s1329_s14, 3 }
   0xe   : > { %p293_p9 = pnand %p1061_p7, %p292_p8 }
   0xf   : > { %s1062_s24 = sshll.u32 (!%p293_p9), %s1405_s8, 4  ;;  %s325_s25 = sand.u32 (!%p293_p9), 1, %s1321_s12  }
  0x10   : > { %296 = sbr.rel (%p293_p9) target bundleno = 712 (0x2c8), region = 56  ;;  %p328_p10 = scmp.lt.s32.totalorder (!%p293_p9), %s1062_s24, 31 }
  0x11   : > { %s999_s28 = scalar_lea.hbm (!%p293_p9), %s1690_s9, %s1405_s8  ;;  %s326_s29 = scalar_lea.vmem (!%p293_p9), [#allocation3], %s325_s25 }
  0x12   : > { %s1003_s10 = sshll.u32 (!%p293_p9), %s999_s28, 4  ;;  %s991_s8 = scalar_lea.sflag (!%p293_p9), [#allocation4], %s325_s25  ;;  %s1004_s10 = int_to_ptr.hbm [resolvable:$true] %s1003_s10 }
  0x13   : > { %s1281_s15 = sshra.s32 (!%p293_p9), %s1004_s10, 4  ;;  %s1287_s23 = scalar_lea.hbm (!%p293_p9), %s1690_s9, 2  ;;  %s1282_s15 = int_to_ptr.hbm [resolvable:$true] %s1281_s15 }
  0x14   : > { %s1283_s17 = scalar_lea.hbm (!%p293_p9), %s1282_s15, 1  ;;  %p1288_p0 = scmp.lt.s32.totalorder (!%p293_p9), %s1282_s15, %s1690_s9 }
  0x15   : > { %v1139_v0 = vld [vmem:[%s1682_s1 + $0x8] sm:$0xff]  ;;  %v1138_v1 = vld [vmem:[%s1682_s1] sm:$0xff]  ;;  %s1698_s24 = smov (!%p328_p10, %s1062_s24), 31  ;;  %vm378_vm0 = vcmask 261120   ;;  %v1143_v22 = vld [vmem:[%s1684_s3 + $0x18] sm:$0xff]  ;;  %vm512_vm1 = vcmask 523264   ;;  %p1284_p11 = scmp.ne.s32.totalorder %s1282_s15, %s1283_s17 }
  0x16   : > { %409 = vmatpush.bf16.msra.mxu0 %v1139_v0  ;;  %s1063_s27 = sshll.u32 %s1698_s24, 3  ;;  %541 = vmatpush.bf16.msra.mxu1 %v1143_v22  ;;  %v1142_v24 = vld [vmem:[%s1684_s3 + $0x10] sm:$0xff]  ;;  %v1141_v25 = vld [vmem:[%s1684_s3 + $0x8] sm:$0xff]  ;;  %v1140_v26 = vld [vmem:[%s1684_s3] sm:$0xff]  ;;  %s811_s24 = sld [smem:[#allocation2]]  ;;  %vm930_vm2 = vcmask 130112  }
  0x17   : > { %s1442_s30 = scalar_lea.vmem %s1681_s0, %s1063_s27  ;;  %v1483_v31 = vld [vmem:[%s1683_s2] ss:$0 sm:$0xff]  ;;  %vm934_vm3 = vcmask 195712   ;;  %vm938_vm4 = vcmask 261312   ;;  %vm942_vm5 = vcmask 326912   ;;  %vm946_vm6 = vcmask 392512   ;;  %p1285_p12 = pnand %p1284_p11, %p1422_p5 }
  0x18   : > { %v334_v2 = vld [vmem:[%s1442_s30] sm:$0xff]  ;;  %v335_v3 = vld [vmem:[%s1442_s30 + $0x8] sm:$0xff]  ;;  %v336_v5 = vld [vmem:[%s1442_s30 + $0x10] sm:$0xff]  ;;  %vm950_vm7 = vcmask 458112   ;;  %vm954_vm8 = vcmask 523712   ;;  %vm958_vm9 = vcmask 589312   ;;  %p1289_p1 = scmp.lt.s32.totalorder %s1287_s23, %s1283_s17 }
  0x19   : > { %v350_v4 = vpack.c.bf16 %v335_v3, %v334_v2  ;;  %v337_v6 = vld [vmem:[%s1442_s30 + $0x18] sm:$0xff]  ;;  %v338_v8 = vld [vmem:[%s1442_s30 + $0x20] sm:$0xff]  ;;  %v339_v9 = vld [vmem:[%s1442_s30 + $0x28] sm:$0xff]  ;;  %vm962_vm10 = vcmask 654912   ;;  %vm966_vm11 = vcmask 720512   ;;  %vm970_vm12 = vcmask 786112   ;;  %p1286_p13 = pneg %p1285_p12 }
  0x1a   : > { %410 = vmatpush.bf16.msra.mxu0 %v1138_v1  ;;  %v351_v7 = vpack.c.bf16 %v337_v6, %v336_v5  ;;  %v352_v10 = vpack.c.bf16 %v339_v9, %v338_v8  ;;  %v340_v11 = vld [vmem:[%s1442_s30 + $0x30] sm:$0xff]  ;;  %v341_v12 = vld [vmem:[%s1442_s30 + $0x38] sm:$0xff]  ;;  %v342_v14 = vld [vmem:[%s1442_s30 + $0x40] sm:$0xff]  ;;  %542 = vmatpush.bf16.msra.mxu1 %v1142_v24  ;;  %vm974_vm13 = vcmask 851712   ;;  %vm978_vm14 = vcmask 917312   ;;  %p1290_p2 = por %p1289_p1, %p1288_p0 }
  0x1b   : > { %v353_v13 = vpack.c.bf16 %v341_v12, %v340_v11  ;;  %v343_v15 = vld [vmem:[%s1442_s30 + $0x48] sm:$0xff]  ;;  %v344_v17 = vld [vmem:[%s1442_s30 + $0x50] sm:$0xff]  ;;  %v345_v18 = vld [vmem:[%s1442_s30 + $0x58] sm:$0xff]  ;;  %vm982_vm15 = vcmask 982912  }
  0x1c   : > { %v354_v16 = vpack.c.bf16 %v343_v15, %v342_v14  ;;  %v355_v19 = vpack.c.bf16 %v345_v18, %v344_v17  ;;  %v346_v20 = vld [vmem:[%s1442_s30 + $0x60] sm:$0xff]  ;;  %v347_v21 = vld [vmem:[%s1442_s30 + $0x68] sm:$0xff]  ;;  %v348_v27 = vld [vmem:[%s1442_s30 + $0x70] sm:$0xff]  ;;  %p1291_p3 = pnand %p1290_p2, %p1286_p13 }
  0x1d   : > { %1072 = vmatmul.msk.bf16.vlgmr.msra.gmra.mxu0 %vm378_vm0, %v350_v4  ;;  %v356_v23 = vpack.c.bf16 %v347_v21, %v346_v20  ;;  %v349_v28 = vld [vmem:[%s1442_s30 + $0x78] sm:$0xff]  ;;  %v1149_v12 = vld [vmem:[%s1686_s5 + $0x28] sm:$0xff]  ;;  %v1146_v21 = vld [vmem:[%s1686_s5 + $0x10] sm:$0xff]  ;;  %s1001_s30 = sshll.u32 %s326_s29, 4  ;;  %s1002_s30 = int_to_ptr.vmem [resolvable:$true] %s1001_s30 }
  0x1e   : > { %543 = vmatpush.bf16.msra.mxu1 %v1141_v25  ;;  %v357_v29 = vpack.c.bf16 %v349_v28, %v348_v27  ;;  %v1151_v6 = vld [vmem:[%s1686_s5 + $0x38] sm:$0xff]  ;;  %v1144_v24 = vld [vmem:[%s1686_s5] sm:$0xff] }
  0x1f   : > { %678 = vmatpush.bf16.msra.mxu2 %v1151_v6  ;;  %1152 = vmatpush.bf16.msra.mxu3 %v1151_v6  ;;  %v1147_v17 = vld [vmem:[%s1686_s5 + $0x18] sm:$0xff] }
  0x22   : > { %544 = vmatpush.bf16.msra.mxu1 %v1140_v26 }
  0x2d   : > { %1073 = vmatmul.msk.bf16.gmra.mxu0 %vm378_vm0, %v351_v7 }
  0x3d   : > { %1074 = vmatmul.msk.bf16.gmra.mxu0 %vm378_vm0, %v352_v10  ;;  %v1150_v10 = vld [vmem:[%s1686_s5 + $0x30] sm:$0xff] }
  0x3e   : > { %679 = vmatpush.bf16.msra.mxu2 %v1150_v10  ;;  %1153 = vmatpush.bf16.msra.mxu3 %v1150_v10 }
  0x42   : > { %680 = vmatpush.bf16.msra.mxu2 %v1149_v12  ;;  %1154 = vmatpush.bf16.msra.mxu3 %v1149_v12 }
  0x4d   : > { %1075 = vmatmul.msk.bf16.gmra.mxu0 %vm378_vm0, %v353_v13  ;;  %v1148_v13 = vld [vmem:[%s1686_s5 + $0x20] sm:$0xff] }
  0x4e   : > { %681 = vmatpush.bf16.msra.mxu2 %v1148_v13  ;;  %1155 = vmatpush.bf16.msra.mxu3 %v1148_v13 }
  0x52   : > { %682 = vmatpush.bf16.msra.mxu2 %v1147_v17  ;;  %1156 = vmatpush.bf16.msra.mxu3 %v1147_v17 }
  0x56   : > { %683 = vmatpush.bf16.msra.mxu2 %v1146_v21  ;;  %1157 = vmatpush.bf16.msra.mxu3 %v1146_v21 }
  0x5d   : > { %1076 = vmatmul.msk.bf16.gmra.mxu0 %vm378_vm0, %v354_v16 }
  0x6d   : > { %1077 = vmatmul.msk.bf16.gmra.mxu0 %vm378_vm0, %v355_v19 }
  0x7d   : > { %1078 = vmatmul.msk.bf16.gmra.mxu0 %vm378_vm0, %v356_v23  ;;  %v1145_v23 = vld [vmem:[%s1686_s5 + $0x8] sm:$0xff] }
  0x7e   : > { %684 = vmatpush.bf16.msra.mxu2 %v1145_v23  ;;  %1158 = vmatpush.bf16.msra.mxu3 %v1145_v23 }
  0x82   : > { %685 = vmatpush.bf16.msra.mxu2 %v1144_v24  ;;  %1159 = vmatpush.bf16.msra.mxu3 %v1144_v24  ;;  %v1539_v24 = vld [vmem:[%s1687_s6] ss:$0 sm:$0xff] }
  0x8d   : > { %1079 = vmatmul.msk.bf16.gmra.mxu0 %vm378_vm0, %v357_v29  ;;  %vm986_vm0 = vcmask 1048512  }
  0x9a   : > { %v412_v30 = vpop.f32.mrf.mxu0 }
  0x9b   : > { %v413_v32 = vadd.f32 %v1483_v31, %v412_v30 }
  0x9d   : > { %v452_v35 = vmax.f32 %v413_v32, 0.0 }
  0xa2   : > { %v414_v33 = vpop.f32.mrf.mxu0 }
  0xa3   : > { %v415_v34 = vadd.f32 %v1483_v31, %v414_v33  ;;  %v1200_v33 = vld [vmem:[%s1685_s4] ss:$0 sm:$0xff] }
  0xa5   : > { %v453_v36 = vmax.f32 %v415_v34, 0.0 }
  0xa7   : > { %v468_v37 = vpack.c.bf16 %v453_v36, %v452_v35 }
  0xa9   : > { %1096 = vmatmul.msk.bf16.vlgmr.msra.gmra.mxu1 %vm512_vm1, %v468_v37 }
  0xaa   : > { %v417_v38 = vpop.f32.mrf.mxu0 }
  0xab   : > { %v418_v39 = vadd.f32 %v1483_v31, %v417_v38 }
  0xad   : > { %v454_v42 = vmax.f32 %v418_v39, 0.0 }
  0xb2   : > { %v419_v40 = vpop.f32.mrf.mxu0 }
  0xb3   : > { %v420_v41 = vadd.f32 %v1483_v31, %v419_v40 }
  0xb5   : > { %v455_v43 = vmax.f32 %v420_v41, 0.0 }
  0xb7   : > { %v469_v44 = vpack.c.bf16 %v455_v43, %v454_v42 }
  0xb9   : > { %1097 = vmatmul.msk.bf16.gmra.mxu1 %vm512_vm1, %v469_v44 }
  0xba   : > { %v422_v45 = vpop.f32.mrf.mxu0 }
  0xbb   : > { %v423_v46 = vadd.f32 %v1483_v31, %v422_v45 }
  0xbd   : > { %v456_v49 = vmax.f32 %v423_v46, 0.0 }
  0xc2   : > { %v424_v47 = vpop.f32.mrf.mxu0 }
  0xc3   : > { %v425_v48 = vadd.f32 %v1483_v31, %v424_v47 }
  0xc5   : > { %v457_v50 = vmax.f32 %v425_v48, 0.0 }
  0xc7   : > { %v470_v51 = vpack.c.bf16 %v457_v50, %v456_v49 }
  0xc9   : > { %1098 = vmatmul.msk.bf16.gmra.mxu1 %vm512_vm1, %v470_v51 }
  0xca   : > { %v427_v52 = vpop.f32.mrf.mxu0 }
  0xcb   : > { %v428_v53 = vadd.f32 %v1483_v31, %v427_v52 }
  0xcd   : > { %v458_v56 = vmax.f32 %v428_v53, 0.0 }
  0xd2   : > { %v429_v54 = vpop.f32.mrf.mxu0 }
  0xd3   : > { %v430_v55 = vadd.f32 %v1483_v31, %v429_v54 }
  0xd5   : > { %v459_v57 = vmax.f32 %v430_v55, 0.0 }
  0xd7   : > { %v471_v58 = vpack.c.bf16 %v459_v57, %v458_v56 }
  0xd9   : > { %1099 = vmatmul.msk.bf16.gmra.mxu1 %vm512_vm1, %v471_v58 }
  0xda   : > { %v432_v59 = vpop.f32.mrf.mxu0 }
  0xdb   : > { %v433_v60 = vadd.f32 %v1483_v31, %v432_v59 }
  0xdd   : > { %v460_v63 = vmax.f32 %v433_v60, 0.0 }
  0xe2   : > { %v434_v61 = vpop.f32.mrf.mxu0 }
  0xe3   : > { %v435_v62 = vadd.f32 %v1483_v31, %v434_v61 }
  0xe5   : > { %v461_v0 = vmax.f32 %v435_v62, 0.0 }
  0xe7   : > { %v472_v1 = vpack.c.bf16 %v461_v0, %v460_v63 }
  0xe9   : > { %1100 = vmatmul.msk.bf16.gmra.mxu1 %vm512_vm1, %v472_v1 }
  0xea   : > { %v437_v2 = vpop.f32.mrf.mxu0 }
  0xeb   : > { %v438_v3 = vadd.f32 %v1483_v31, %v437_v2 }
  0xed   : > { %v462_v7 = vmax.f32 %v438_v3, 0.0 }
  0xf2   : > { %v439_v4 = vpop.f32.mrf.mxu0 }
  0xf3   : > { %v440_v5 = vadd.f32 %v1483_v31, %v439_v4 }
  0xf5   : > { %v463_v8 = vmax.f32 %v440_v5, 0.0 }
  0xf7   : > { %v473_v9 = vpack.c.bf16 %v463_v8, %v462_v7 }
  0xf9   : > { %1101 = vmatmul.msk.bf16.gmra.mxu1 %vm512_vm1, %v473_v9 }
  0xfa   : > { %v442_v11 = vpop.f32.mrf.mxu0 }
  0xfb   : > { %v443_v14 = vadd.f32 %v1483_v31, %v442_v11 }
  0xfd   : > { %v464_v18 = vmax.f32 %v443_v14, 0.0 }
 0x102   : > { %v444_v15 = vpop.f32.mrf.mxu0 }
 0x103   : > { %v445_v16 = vadd.f32 %v1483_v31, %v444_v15 }
 0x105   : > { %v465_v19 = vmax.f32 %v445_v16, 0.0 }
 0x107   : > { %v474_v20 = vpack.c.bf16 %v465_v19, %v464_v18 }
 0x109   : > { %1102 = vmatmul.msk.bf16.gmra.mxu1 %vm512_vm1, %v474_v20 }
 0x10a   : > { %v447_v22 = vpop.f32.mrf.mxu0 }
 0x10b   : > { %v448_v25 = vadd.f32 %v1483_v31, %v447_v22 }
 0x10d   : > { %v466_v28 = vmax.f32 %v448_v25, 0.0 }
 0x112   : > { %v449_v26 = vpop.f32.mrf.mxu0 }
 0x113   : > { %v450_v27 = vadd.f32 %v1483_v31, %v449_v26 }
 0x115   : > { %v467_v29 = vmax.f32 %v450_v27, 0.0  ;;  %v1545_v27 = vld [vmem:[%s1688_s7] ss:$0 sm:$0xff] }
 0x117   : > { %v475_v30 = vpack.c.bf16 %v467_v29, %v466_v28 }
 0x119   : > { %1103 = vmatmul.msk.bf16.gmra.mxu1 %vm512_vm1, %v475_v30 }
 0x126   : > { %v546_v32 = vpop.f32.mrf.mxu1 }
 0x127   : > { %v547_v34 = vadd.f32 %v1200_v33, %v546_v32 }
 0x129   : > { %v586_v37 = vmax.f32 %v547_v34, 0.0 }
 0x12e   : > { %v548_v35 = vpop.f32.mrf.mxu1 }
 0x12f   : > { %v549_v36 = vadd.f32 %v1200_v33, %v548_v35 }
 0x131   : > { %v587_v38 = vmax.f32 %v549_v36, 0.0 }
 0x133   : > { %v602_v39 = vpack.c.bf16 %v587_v38, %v586_v37 }
 0x135   : > { %686 = vmatmul.bf16.vlgmr.msra.gmra.mxu2 %v602_v39 }
 0x136   : > { %v551_v40 = vpop.f32.mrf.mxu1 }
 0x137   : > { %v552_v41 = vadd.f32 %v1200_v33, %v551_v40 }
 0x139   : > { %v588_v43 = vmax.f32 %v552_v41, 0.0 }
 0x13e   : > { %v553_v31 = vpop.f32.mrf.mxu1 }
 0x13f   : > { %v554_v42 = vadd.f32 %v1200_v33, %v553_v31 }
 0x141   : > { %v589_v44 = vmax.f32 %v554_v42, 0.0 }
 0x143   : > { %v603_v45 = vpack.c.bf16 %v589_v44, %v588_v43 }
 0x145   : > { %691 = vmatmul.bf16.gmra.mxu2 %v603_v45 }
 0x146   : > { %v556_v46 = vpop.f32.mrf.mxu1 }
 0x147   : > { %v557_v47 = vadd.f32 %v1200_v33, %v556_v46 }
 0x149   : > { %v590_v50 = vmax.f32 %v557_v47, 0.0 }
 0x14e   : > { %v558_v48 = vpop.f32.mrf.mxu1 }
 0x14f   : > { %v559_v49 = vadd.f32 %v1200_v33, %v558_v48 }
 0x151   : > { %v591_v51 = vmax.f32 %v559_v49, 0.0 }
 0x153   : > { %v604_v52 = vpack.c.bf16 %v591_v51, %v590_v50 }
 0x155   : > { %696 = vmatmul.bf16.gmra.mxu2 %v604_v52 }
 0x156   : > { %v561_v53 = vpop.f32.mrf.mxu1 }
 0x157   : > { %v562_v54 = vadd.f32 %v1200_v33, %v561_v53 }
 0x159   : > { %v592_v57 = vmax.f32 %v562_v54, 0.0 }
 0x15e   : > { %v563_v55 = vpop.f32.mrf.mxu1 }
 0x15f   : > { %v564_v56 = vadd.f32 %v1200_v33, %v563_v55 }
 0x161   : > { %v593_v58 = vmax.f32 %v564_v56, 0.0 }
 0x163   : > { %v605_v59 = vpack.c.bf16 %v593_v58, %v592_v57 }
 0x165   : > { %701 = vmatmul.bf16.gmra.mxu2 %v605_v59 }
 0x166   : > { %v566_v60 = vpop.f32.mrf.mxu1 }
 0x167   : > { %v567_v61 = vadd.f32 %v1200_v33, %v566_v60 }
 0x169   : > { %v594_v0 = vmax.f32 %v567_v61, 0.0 }
 0x16e   : > { %v568_v62 = vpop.f32.mrf.mxu1 }
 0x16f   : > { %v569_v63 = vadd.f32 %v1200_v33, %v568_v62 }
 0x171   : > { %v595_v1 = vmax.f32 %v569_v63, 0.0 }
 0x173   : > { %v606_v2 = vpack.c.bf16 %v595_v1, %v594_v0 }
 0x175   : > { %706 = vmatmul.bf16.gmra.mxu2 %v606_v2 }
 0x176   : > { %v571_v3 = vpop.f32.mrf.mxu1 }
 0x177   : > { %v572_v4 = vadd.f32 %v1200_v33, %v571_v3 }
 0x179   : > { %v596_v7 = vmax.f32 %v572_v4, 0.0 }
 0x17e   : > { %v573_v5 = vpop.f32.mrf.mxu1 }
 0x17f   : > { %v574_v6 = vadd.f32 %v1200_v33, %v573_v5 }
 0x181   : > { %v597_v8 = vmax.f32 %v574_v6, 0.0 }
 0x183   : > { %v607_v9 = vpack.c.bf16 %v597_v8, %v596_v7 }
 0x185   : > { %711 = vmatmul.bf16.gmra.mxu2 %v607_v9 }
 0x186   : > { %v576_v10 = vpop.f32.mrf.mxu1 }
 0x187   : > { %v577_v11 = vadd.f32 %v1200_v33, %v576_v10 }
 0x189   : > { %v598_v14 = vmax.f32 %v577_v11, 0.0 }
 0x18e   : > { %v578_v12 = vpop.f32.mrf.mxu1 }
 0x18f   : > { %v579_v13 = vadd.f32 %v1200_v33, %v578_v12 }
 0x191   : > { %v599_v15 = vmax.f32 %v579_v13, 0.0 }
 0x193   : > { %v608_v16 = vpack.c.bf16 %v599_v15, %v598_v14 }
 0x195   : > { %716 = vmatmul.bf16.vlgmr.msra.gmra.mxu3 %v608_v16 }
 0x196   : > { %v581_v17 = vpop.f32.mrf.mxu1 }
 0x197   : > { %v582_v18 = vadd.f32 %v1200_v33, %v581_v17 }
 0x199   : > { %v600_v21 = vmax.f32 %v582_v18, 0.0 }
 0x19e   : > { %v583_v19 = vpop.f32.mrf.mxu1 }
 0x19f   : > { %v584_v20 = vadd.f32 %v1200_v33, %v583_v19 }
 0x1a1   : > { %v601_v22 = vmax.f32 %v584_v20, 0.0 }
 0x1a3   : > { %v609_v23 = vpack.c.bf16 %v601_v22, %v600_v21 }
 0x1a5   : > { %721 = vmatmul.bf16.gmra.mxu3 %v609_v23 }
 0x1b8   : > { %v687_v25 = vpop.f32.mrf.mxu2 }
 0x1b9   : > { %v688_v26 = vadd.f32 %v1539_v24, %v687_v25 }
 0x1bb   : > { %v727_v28 = vmax.f32 %v688_v26, 0.0 }
 0x1bd   : > { %v747_v29 = vmul.f32 %v1545_v27, %v727_v28 }
 0x1bf   : > { %v763_v30 = vsel %vm512_vm1, %v747_v29, 0.0 }
 0x1c0   : > { %v689_v32 = vpop.f32.mrf.mxu2  ;;  %764 = vadd.xlane.f32.xlu0 %v763_v30 }
 0x1c1   : > { %v690_v33 = vadd.f32 %v1539_v24, %v689_v32 }
 0x1c3   : > { %v728_v34 = vmax.f32 %v690_v33, 0.0 }
 0x1c5   : > { %v748_v35 = vmul.f32 %v1545_v27, %v728_v34 }
 0x1c7   : > { %v766_v36 = vsel %vm512_vm1, %v748_v35, 0.0 }
 0x1c8   : > { %v692_v37 = vpop.f32.mrf.mxu2  ;;  %767 = vadd.xlane.f32.xlu0 %v766_v36 }
 0x1c9   : > { %v693_v38 = vadd.f32 %v1539_v24, %v692_v37 }
 0x1cb   : > { %v729_v39 = vmax.f32 %v693_v38, 0.0 }
 0x1cd   : > { %v749_v40 = vmul.f32 %v1545_v27, %v729_v39 }
 0x1cf   : > { %v769_v41 = vsel %vm512_vm1, %v749_v40, 0.0 }
 0x1d0   : > { %v694_v31 = vpop.f32.mrf.mxu2  ;;  %770 = vadd.xlane.f32.xlu1 %v769_v41 }
 0x1d1   : > { %v695_v42 = vadd.f32 %v1539_v24, %v694_v31 }
 0x1d3   : > { %v730_v43 = vmax.f32 %v695_v42, 0.0 }
 0x1d5   : > { %v750_v44 = vmul.f32 %v1545_v27, %v730_v43 }
 0x1d7   : > { %v772_v45 = vsel %vm512_vm1, %v750_v44, 0.0 }
 0x1d8   : > { %v697_v46 = vpop.f32.mrf.mxu2  ;;  %773 = vadd.xlane.f32.xlu1 %v772_v45 }
 0x1d9   : > { %v698_v47 = vadd.f32 %v1539_v24, %v697_v46 }
 0x1db   : > { %v731_v48 = vmax.f32 %v698_v47, 0.0  ;;  %v1594_v47 = vstv %s811_s24 }
 0x1dd   : > { %v751_v49 = vmul.f32 %v1545_v27, %v731_v48 }
 0x1df   : > { %v775_v50 = vsel %vm512_vm1, %v751_v49, 0.0 }
 0x1e0   : > { %v699_v51 = vpop.f32.mrf.mxu2  ;;  %776 = vadd.xlane.f32.xlu2 %v775_v50 }
 0x1e1   : > { %v700_v52 = vadd.f32 %v1539_v24, %v699_v51 }
 0x1e3   : > { %v732_v53 = vmax.f32 %v700_v52, 0.0 }
 0x1e5   : > { %v752_v54 = vmul.f32 %v1545_v27, %v732_v53 }
 0x1e7   : > { %v778_v55 = vsel %vm512_vm1, %v752_v54, 0.0 }
 0x1e8   : > { %v702_v56 = vpop.f32.mrf.mxu2  ;;  %779 = vadd.xlane.f32.xlu2 %v778_v55 }
 0x1e9   : > { %v703_v57 = vadd.f32 %v1539_v24, %v702_v56 }
 0x1eb   : > { %v733_v58 = vmax.f32 %v703_v57, 0.0 }
 0x1ed   : > { %v753_v59 = vmul.f32 %v1545_v27, %v733_v58 }
 0x1ef   : > { %v781_v60 = vsel %vm512_vm1, %v753_v59, 0.0 }
 0x1f0   : > { %v704_v61 = vpop.f32.mrf.mxu2  ;;  %782 = vadd.xlane.f32.xlu0 %v781_v60 }
 0x1f1   : > { %v705_v62 = vadd.f32 %v1539_v24, %v704_v61 }
 0x1f3   : > { %v734_v63 = vmax.f32 %v705_v62, 0.0 }
 0x1f5   : > { %v754_v0 = vmul.f32 %v1545_v27, %v734_v63 }
 0x1f7   : > { %v784_v1 = vsel %vm512_vm1, %v754_v0, 0.0 }
 0x1f8   : > { %v707_v2 = vpop.f32.mrf.mxu2  ;;  %785 = vadd.xlane.f32.xlu1 %v784_v1 }
 0x1f9   : > { %v708_v3 = vadd.f32 %v1539_v24, %v707_v2 }
 0x1fb   : > { %v735_v4 = vmax.f32 %v708_v3, 0.0 }
 0x1fd   : > { %v755_v5 = vmul.f32 %v1545_v27, %v735_v4 }
 0x1ff   : > { %v787_v6 = vsel %vm512_vm1, %v755_v5, 0.0 }
 0x200   : > { %v709_v7 = vpop.f32.mrf.mxu2  ;;  %788 = vadd.xlane.f32.xlu2 %v787_v6 }
 0x201   : > { %v710_v8 = vadd.f32 %v1539_v24, %v709_v7 }
 0x203   : > { %v736_v9 = vmax.f32 %v710_v8, 0.0 }
 0x205   : > { %v756_v10 = vmul.f32 %v1545_v27, %v736_v9 }
 0x207   : > { %v790_v11 = vsel %vm512_vm1, %v756_v10, 0.0 }
 0x208   : > { %v712_v12 = vpop.f32.mrf.mxu2  ;;  %791 = vadd.xlane.f32.xlu0 %v790_v11 }
 0x209   : > { %v713_v13 = vadd.f32 %v1539_v24, %v712_v12 }
 0x20b   : > { %v737_v14 = vmax.f32 %v713_v13, 0.0 }
 0x20d   : > { %v757_v15 = vmul.f32 %v1545_v27, %v737_v14 }
 0x20f   : > { %v793_v16 = vsel %vm512_vm1, %v757_v15, 0.0 }
 0x210   : > { %v714_v17 = vpop.f32.mrf.mxu2  ;;  %794 = vadd.xlane.f32.xlu1 %v793_v16 }
 0x211   : > { %v715_v18 = vadd.f32 %v1539_v24, %v714_v17 }
 0x213   : > { %v738_v19 = vmax.f32 %v715_v18, 0.0 }
 0x215   : > { %v758_v20 = vmul.f32 %v1545_v27, %v738_v19 }
 0x217   : > { %v796_v21 = vsel %vm512_vm1, %v758_v20, 0.0 }
 0x218   : > { %v717_v22 = vpop.f32.mrf.mxu3  ;;  %797 = vadd.xlane.f32.xlu2 %v796_v21 }
 0x219   : > { %v718_v23 = vadd.f32 %v1539_v24, %v717_v22 }
 0x21b   : > { %v739_v25 = vmax.f32 %v718_v23, 0.0 }
 0x21d   : > { %v759_v26 = vmul.f32 %v1545_v27, %v739_v25 }
 0x21f   : > { %v799_v28 = vsel %vm512_vm1, %v759_v26, 0.0 }
 0x220   : > { %v719_v29 = vpop.f32.mrf.mxu3  ;;  %800 = vadd.xlane.f32.xlu0 %v799_v28 }
 0x221   : > { %v720_v30 = vadd.f32 %v1539_v24, %v719_v29 }
 0x223   : > { %v740_v32 = vmax.f32 %v720_v30, 0.0 }
 0x225   : > { %v760_v33 = vmul.f32 %v1545_v27, %v740_v32 }
 0x227   : > { %v802_v34 = vsel %vm512_vm1, %v760_v33, 0.0 }
 0x228   : > { %v722_v35 = vpop.f32.mrf.mxu3  ;;  %803 = vadd.xlane.f32.xlu1 %v802_v34 }
 0x229   : > { %v723_v36 = vadd.f32 %v1539_v24, %v722_v35 }
 0x22b   : > { %v741_v37 = vmax.f32 %v723_v36, 0.0 }
 0x22d   : > { %v761_v38 = vmul.f32 %v1545_v27, %v741_v37 }
 0x22f   : > { %v805_v39 = vsel %vm512_vm1, %v761_v38, 0.0 }
 0x230   : > { %v724_v40 = vpop.f32.mrf.mxu3  ;;  %806 = vadd.xlane.f32.xlu2 %v805_v39 }
 0x231   : > { %v725_v41 = vadd.f32 %v1539_v24, %v724_v40 }
 0x233   : > { %v742_v31 = vmax.f32 %v725_v41, 0.0  ;;  %v765_v44 = vpop.xlane.xlu0 %764 }
 0x234   : > { %v813_v49 = vadd.f32 %v1594_v47, %v765_v44 }
 0x235   : > { %v762_v42 = vmul.f32 %v1545_v27, %v742_v31 }
 0x236   : > { %v829_v52 = vsub.f32 0.0, %v813_v49 }
 0x237   : > { %v808_v43 = vsel %vm512_vm1, %v762_v42, 0.0 }
 0x238   : > { %809 = vadd.xlane.f32.xlu0 %v808_v43  ;;  %v845_v27 = vmul.f32 1.442695, %v829_v52 }
 0x23a   : > { %1203 = vpow2.f32 %v845_v27 }
 0x23b   : > { %v768_v48 = vpop.xlane.xlu0 %767 }
 0x23c   : > { %v814_v51 = vadd.f32 %v1594_v47, %v768_v48 }
 0x23e   : > { %v830_v53 = vsub.f32 0.0, %v814_v51 }
 0x240   : > { %v847_v56 = vmul.f32 1.442695, %v830_v53  ;;  %v1204_v1 = vpop.eup %1203 }
 0x241   : > { %v877_v9 = vadd.f32 1.0, %v1204_v1 }
 0x242   : > { %1205 = vpow2.f32 %v847_v56 }
 0x243   : > { %v771_v45 = vpop.xlane.xlu1 %770 }
 0x244   : > { %v815_v57 = vadd.f32 %v1594_v47, %v771_v45 }
 0x246   : > { %v831_v59 = vsub.f32 0.0, %v815_v57 }
 0x248   : > { %v849_v2 = vmul.f32 1.442695, %v831_v59  ;;  %v1206_v6 = vpop.eup %1205 }
 0x249   : > { %v878_v17 = vadd.f32 1.0, %v1206_v6 }
 0x24a   : > { %1207 = vpow2.f32 %v849_v2 }
 0x24b   : > { %v774_v50 = vpop.xlane.xlu1 %773  ;;  %1209 = vrcp.f32 %v877_v9 }
 0x24c   : > { %v816_v60 = vadd.f32 %v1594_v47, %v774_v50 }
 0x24e   : > { %v832_v3 = vsub.f32 0.0, %v816_v60 }
 0x250   : > { %v851_v13 = vmul.f32 1.442695, %v832_v3  ;;  %v1208_v33 = vpop.eup %1207 }
 0x251   : > { %v1610_v40 = vpop.eup %1209  ;;  %v879_v41 = vadd.f32 1.0, %v1208_v33 }
 0x252   : > { %1211 = vpow2.f32 %v851_v13 }
 0x253   : > { %v777_v46 = vpop.xlane.xlu2 %776  ;;  %1213 = vrcp.f32 %v878_v17 }
 0x254   : > { %v817_v62 = vadd.f32 %v1594_v47, %v777_v46 }
 0x256   : > { %v833_v7 = vsub.f32 0.0, %v817_v62 }
 0x258   : > { %v853_v19 = vmul.f32 1.442695, %v833_v7  ;;  %v1212_v31 = vpop.eup %1211 }
 0x259   : > { %v1612_v43 = vpop.eup %1213  ;;  %v880_v51 = vadd.f32 1.0, %v1212_v31 }
 0x25a   : > { %1215 = vpow2.f32 %v853_v19 }
 0x25b   : > { %v780_v24 = vpop.xlane.xlu2 %779 }
 0x25c   : > { %v818_v63 = vadd.f32 %v1594_v47, %v780_v24 }
 0x25e   : > { %v834_v10 = vsub.f32 0.0, %v818_v63 }
 0x260   : > { %v855_v22 = vmul.f32 1.442695, %v834_v10  ;;  %v1216_v46 = vpop.eup %1215 }
 0x261   : > { %v881_v27 = vadd.f32 1.0, %v1216_v46 }
 0x262   : > { %1217 = vpow2.f32 %v855_v22 }
 0x263   : > { %v783_v54 = vpop.xlane.xlu0 %782 }
 0x264   : > { %v819_v4 = vadd.f32 %v1594_v47, %v783_v54  ;;  %v925_v54 = vlaneseq }
 0x266   : > { %v835_v14 = vsub.f32 0.0, %v819_v4  ;;  %v1615_v63 = vand.u32 127, %v925_v54 }
 0x268   : > { %v857_v28 = vmul.f32 1.442695, %v835_v14  ;;  %v1218_v50 = vpop.eup %1217  ;;  %v928_v6 = vadd.s32 4294967288, %v1615_v63  ;;  %v932_v9 = vadd.s32 4294967280, %v1615_v63  ;;  %v968_v46 = vadd.s32 4294967208, %v1615_v63 }
 0x269   : > { %v882_v56 = vadd.f32 1.0, %v1218_v50 }
 0x26a   : > { %1219 = vpow2.f32 %v857_v28  ;;  %v929_v17 = vperm.slane %v1612_v43, %v928_v6  ;;  %v948_v28 = vadd.s32 4294967248, %v1615_v63 }
 0x26b   : > { %v786_v55 = vpop.xlane.xlu1 %785 }
 0x26c   : > { %v820_v5 = vadd.f32 %v1594_v47, %v786_v55 }
 0x26e   : > { %v836_v18 = vsub.f32 0.0, %v820_v5 }
 0x270   : > { %v859_v32 = vmul.f32 1.442695, %v836_v18  ;;  %v1220_v52 = vpop.eup %1219  ;;  %v940_v18 = vadd.s32 4294967264, %v1615_v63 }
 0x271   : > { %v883_v59 = vadd.f32 1.0, %v1220_v52 }
 0x272   : > { %1221 = vpow2.f32 %v859_v32  ;;  %v952_v32 = vadd.s32 4294967240, %v1615_v63 }
 0x273   : > { %v789_v58 = vpop.xlane.xlu2 %788 }
 0x274   : > { %v821_v8 = vadd.f32 %v1594_v47, %v789_v58 }
 0x276   : > { %v837_v20 = vsub.f32 0.0, %v821_v8 }
 0x278   : > { %v861_v34 = vmul.f32 1.442695, %v837_v20  ;;  %v1222_v53 = vpop.eup %1221 }
 0x27a   : > { %1223 = vpow2.f32 %v861_v34 }
 0x27b   : > { %v792_v61 = vpop.xlane.xlu0 %791 }
 0x27c   : > { %v822_v11 = vadd.f32 %v1594_v47, %v792_v61  ;;  %v884_v61 = vadd.f32 1.0, %v1222_v53 }
 0x27e   : > { %v838_v23 = vsub.f32 0.0, %v822_v11 }
 0x280   : > { %v863_v36 = vmul.f32 1.442695, %v838_v23  ;;  %v1224_v55 = vpop.eup %1223 }
 0x282   : > { %1225 = vpow2.f32 %v863_v36  ;;  %v956_v36 = vadd.s32 4294967232, %v1615_v63 }
 0x283   : > { %v795_v0 = vpop.xlane.xlu1 %794 }
 0x284   : > { %v823_v15 = vadd.f32 %v1594_v47, %v795_v0  ;;  %v885_v0 = vadd.f32 1.0, %v1224_v55 }
 0x286   : > { %v839_v29 = vsub.f32 0.0, %v823_v15 }
 0x288   : > { %v865_v38 = vmul.f32 1.442695, %v839_v29  ;;  %v1226_v58 = vpop.eup %1225 }
 0x289   : > { %v886_v3 = vadd.f32 1.0, %v1226_v58  ;;  %v980_v58 = vadd.s32 4294967184, %v1615_v63 }
 0x28a   : > { %1227 = vpow2.f32 %v865_v38 }
 0x28b   : > { %v798_v12 = vpop.xlane.xlu2 %797  ;;  %1229 = vrcp.f32 %v879_v41 }
 0x28c   : > { %v824_v21 = vadd.f32 %v1594_v47, %v798_v12  ;;  %v936_v12 = vadd.s32 4294967272, %v1615_v63 }
 0x28e   : > { %v840_v35 = vsub.f32 0.0, %v824_v21  ;;  %v944_v21 = vadd.s32 4294967256, %v1615_v63 }
 0x290   : > { %v867_v42 = vmul.f32 1.442695, %v840_v35  ;;  %v1228_v60 = vpop.eup %1227 }
 0x291   : > { %v1230_v62 = vpop.eup %1229  ;;  %v887_v7 = vadd.f32 1.0, %v1228_v60 }
 0x292   : > { %1231 = vpow2.f32 %v867_v42  ;;  %v964_v42 = vadd.s32 4294967216, %v1615_v63 }
 0x293   : > { %v801_v16 = vpop.xlane.xlu0 %800 }
 0x294   : > { %v825_v25 = vadd.f32 %v1594_v47, %v801_v16 }
 0x296   : > { %v841_v37 = vsub.f32 0.0, %v825_v25  ;;  %v927_v25 = vperm.slane %v1610_v40, %v1615_v63 }
 0x298   : > { %v869_v44 = vmul.f32 1.442695, %v841_v37  ;;  %v1232_v2 = vpop.eup %1231  ;;  %v931_v34 = vsel %vm930_vm2, %v929_v17, %v927_v25 }
 0x299   : > { %v888_v13 = vadd.f32 1.0, %v1232_v2 }
 0x29a   : > { %1233 = vpow2.f32 %v869_v44 }
 0x29b   : > { %v804_v26 = vpop.xlane.xlu1 %803 }
 0x29c   : > { %v826_v30 = vadd.f32 %v1594_v47, %v804_v26  ;;  %v933_v26 = vperm.slane %v1230_v62, %v932_v9 }
 0x29e   : > { %v842_v39 = vsub.f32 0.0, %v826_v30  ;;  %v935_v41 = vsel %vm934_vm3, %v933_v26, %v931_v34 }
 0x2a0   : > { %v871_v48 = vmul.f32 1.442695, %v842_v39  ;;  %v1234_v5 = vpop.eup %1233  ;;  %v960_v39 = vadd.s32 4294967224, %v1615_v63 }
 0x2a2   : > { %1235 = vpow2.f32 %v871_v48 }
 0x2a3   : > { %v807_v45 = vpop.xlane.xlu2 %806  ;;  %1237 = vrcp.f32 %v880_v51  ;;  %v972_v51 = vadd.s32 4294967200, %v1615_v63 }
 0x2a4   : > { %v827_v49 = vadd.f32 %v1594_v47, %v807_v45 }
 0x2a6   : > { %v843_v24 = vsub.f32 0.0, %v827_v49 }
 0x2a8   : > { %v873_v57 = vmul.f32 1.442695, %v843_v24  ;;  %v1236_v8 = vpop.eup %1235 }
 0x2a9   : > { %v1238_v11 = vpop.eup %1237  ;;  %v890_v19 = vadd.f32 1.0, %v1236_v8 }
 0x2aa   : > { %1239 = vpow2.f32 %v873_v57  ;;  %v937_v30 = vperm.slane %v1238_v11, %v936_v12 }
 0x2ab   : > { %1241 = vrcp.f32 %v881_v27  ;;  %v810_v1 = vpop.xlane.xlu0 %809  ;;  %v976_v27 = vadd.s32 4294967192, %v1615_v63 }
 0x2ac   : > { %1243 = vrcp.f32 %v882_v56  ;;  %v828_v4 = vadd.f32 %v1594_v47, %v810_v1  ;;  %v889_v47 = vadd.f32 1.0, %v1234_v5  ;;  %v939_v44 = vsel %vm938_vm4, %v937_v30, %v935_v41 }
 0x2ad   : > { %1245 = vrcp.f32 %v883_v59 }
 0x2ae   : > { %1247 = vrcp.f32 %v884_v61  ;;  %v844_v10 = vsub.f32 0.0, %v828_v4 }
 0x2af   : > { %1249 = vrcp.f32 %v885_v0 }
 0x2b0   : > { %v1240_v14 = vpop.eup %1239  ;;  %1251 = vrcp.f32 %v886_v3  ;;  %v875_v15 = vmul.f32 1.442695, %v844_v10  ;;  %v984_v3 = vadd.s32 4294967176, %v1615_v63 }
 0x2b1   : > { %v1242_v16 = vpop.eup %1241  ;;  %1253 = vrcp.f32 %v887_v7  ;;  %v891_v22 = vadd.f32 1.0, %v1240_v14 }
 0x2b2   : > { %v1244_v20 = vpop.eup %1243  ;;  %1255 = vpow2.f32 %v875_v15  ;;  %v941_v35 = vperm.slane %v1242_v16, %v940_v18 }
 0x2b3   : > { %v1246_v23 = vpop.eup %1245  ;;  %1257 = vrcp.f32 %v888_v13  ;;  %v945_v38 = vperm.slane %v1244_v20, %v944_v21 }
 0x2b4   : > { %v1248_v29 = vpop.eup %1247  ;;  %1259 = vrcp.f32 %v889_v47  ;;  %v949_v31 = vperm.slane %v1246_v23, %v948_v28  ;;  %v943_v49 = vsel %vm942_vm5, %v941_v35, %v939_v44 }
 0x2b5   : > { %v1250_v33 = vpop.eup %1249  ;;  %1261 = vrcp.f32 %v890_v19  ;;  %v953_v45 = vperm.slane %v1248_v29, %v952_v32  ;;  %v947_v53 = vsel %vm946_vm6, %v945_v38, %v943_v49 }
 0x2b6   : > { %v1252_v37 = vpop.eup %1251  ;;  %1263 = vrcp.f32 %v891_v22  ;;  %v957_v50 = vperm.slane %v1250_v33, %v956_v36  ;;  %v951_v56 = vsel %vm950_vm7, %v949_v31, %v947_v53 }
 0x2b7   : > { %v1254_v40 = vpop.eup %1253  ;;  %v961_v54 = vperm.slane %v1252_v37, %v960_v39  ;;  %v955_v60 = vsel %vm954_vm8, %v953_v45, %v951_v56 }
 0x2b8   : > { %v1256_v43 = vpop.eup %1255  ;;  %v965_v57 = vperm.slane %v1254_v40, %v964_v42  ;;  %v959_v62 = vsel %vm958_vm9, %v957_v50, %v955_v60 }
 0x2b9   : > { %v1258_v48 = vpop.eup %1257  ;;  %v892_v52 = vadd.f32 1.0, %v1256_v43  ;;  %v963_v1 = vsel %vm962_vm10, %v961_v54, %v959_v62 }
 0x2ba   : > { %v1260_v24 = vpop.eup %1259  ;;  %v969_v61 = vperm.slane %v1258_v48, %v968_v46  ;;  %v967_v4 = vsel %vm966_vm11, %v965_v57, %v963_v1 }
 0x2bb   : > { %v1262_v55 = vpop.eup %1261  ;;  %1265 = vrcp.f32 %v892_v52  ;;  %v973_v0 = vperm.slane %v1260_v24, %v972_v51 }
 0x2bc   : > { %v1264_v59 = vpop.eup %1263  ;;  %v977_v2 = vperm.slane %v1262_v55, %v976_v27  ;;  %v971_v6 = vsel %vm970_vm12, %v969_v61, %v967_v4 }
 0x2bd   : > { %v981_v5 = vperm.slane %v1264_v59, %v980_v58  ;;  %v975_v8 = vsel %vm974_vm13, %v973_v0, %v971_v6 }
 0x2be   : > { %v979_v9 = vsel %vm978_vm14, %v977_v2, %v975_v8 }
 0x2bf   : > { %v983_v11 = vsel %vm982_vm15, %v981_v5, %v979_v9 }
 0x2c1   : > { %v1266_v7 = vpop.eup %1265 }
 0x2c2   : > { %v985_v10 = vperm.slane %v1266_v7, %v984_v3 }
 0x2c4   : > { %v987_v63 = vsel %vm986_vm0, %v985_v10, %v983_v11 }
 0x2c5   : > { %989 = vst [vmem:[%s326_s29] sm:$0x1] %v987_v63 }
 0x2c6   : > { %1294 = shalt.err (!%p1291_p3)
}
 0x2c7   : > { %1160 = dma.vmem_to_hbm [thread:$0]  (%p1422_p5), %s1002_s30, 16, %s1004_s10, %s991_s8  }
 0x2c8 PF: > { %p1166_p4 = scmp.ge.s32.totalorder %s1329_s14, 2  ;;  %s1015_s25 = sand.u32 1, %s1317_s11  }
 0x2c9   : > { %s1016_s27 = scalar_lea.sflag [#allocation4], %s1015_s25 }
 0x2ca   : > { %p1163_p7 = pnand %p1166_p4, %p1426_p6 }
 0x2cc   : > { %p1164_p8 = pneg %p1163_p7 }
 0x2ce   : > { %1312 = dma.done.wait (%p1164_p8), %s1016_s27, 16  }
 0x2cf   : > { %1314 = vsyncadd (%p1164_p8), %s1016_s27, 4294967280  ;;  %p20_p9 = scmp.ge.s32.totalorder %s1409_s16, 4   ;;  %s1693_s11 = smov %s1321_s12 }
 0x2d0   : > { %s1694_s12 = smov %s1325_s13  ;;  %s1695_s13 = smov %s1420_s19 }
 0x2d1   : > { %s1696_s14 = smov %s1409_s16  ;;  %22 = sbr.rel (!%p20_p9) target bundleno = 5 (0x5), region = 91 }
 0x2d6   :  { %1021 = vsyncpa [#allocation4], 1 }
 0x2d7   :  { %1023 = vsyncpa [#allocation4 + $0x1], 1 }

</bundles_post_ra>
